<compile_context>
chip_gen: v7x
topology: tpu7x:2x2x1
jax: 0.10.0
libtpu: 0.0.40
codegen_flags: <defaults>
</compile_context>

<pallas_src>
import functools

import jax
import jax.numpy as jnp
from jax.experimental import pallas as pl
from jax.experimental.pallas import tpu as pltpu


def _t5_ff_kernel(x_ref, lnw_ref, wi_ref, wo_ref, o_ref, norm_ref, acc_ref, *, eps):
    # x_ref:    (TM, D)   residual input tile
    # lnw_ref:  (1, D)    layer-norm scale (resident)
    # wi_ref:   (D, TF)   first-projection F-tile
    # wo_ref:   (TF, D)   second-projection F-tile
    # o_ref:    (TM, D)   output tile (written on last F step)
    # norm_ref: (TM, D)   bf16 normalized activations (scratch, computed once per M-tile)
    # acc_ref:  (TM, D)   fp32 accumulator (scratch)
    f = pl.program_id(1)

    @pl.when(f == 0)
    def _init():
        xf = x_ref[...].astype(jnp.float32)
        # T5 layer norm: no mean subtraction, no bias (fp32 math).
        var = jnp.mean(xf * xf, axis=-1, keepdims=True)
        norm = lnw_ref[...].astype(jnp.float32) * (xf * jax.lax.rsqrt(var + eps))
        norm_ref[...] = norm.astype(norm_ref.dtype)
        acc_ref[...] = jnp.zeros_like(acc_ref)

    # Dense-ReLU-Dense over one F-tile, accumulated in fp32 on the MXU.
    h = jnp.dot(norm_ref[...], wi_ref[...], preferred_element_type=jnp.float32)
    h = jnp.maximum(h, 0.0)
    acc_ref[...] += jnp.dot(h.astype(wo_ref.dtype), wo_ref[...],
                            preferred_element_type=jnp.float32)

    @pl.when(f == pl.num_programs(1) - 1)
    def _finalize():
        # Residual add in fp32 (dropout is identity at inference).
        o_ref[...] = (x_ref[...].astype(jnp.float32) + acc_ref[...]).astype(o_ref.dtype)


def _pick_f_tile(F, tf_pref):
    """Pick a d_ff tile that divides F exactly (no padded reduction steps)."""
    if F <= tf_pref:
        return F
    for cand in (tf_pref, 2048, 1536, 1024, 768, 512, 384, 256, 128):
        if cand <= F and F % cand == 0:
            return cand
    # TODO(synk): odd d_ff that no 128-multiple divides -> fall back to one big tile.
    return F


def t5_layer_ff(hidden_states, ln_weight, wi_t, wo_t, *, eps=1e-6,
                matmul_dtype=jnp.bfloat16, tm=512, tf=2048):
    """hidden_states: [B, S, D]; ln_weight: [D]; wi_t: [D, F]; wo_t: [F, D]."""
    B, S, D = hidden_states.shape
    F = wi_t.shape[1]
    M = B * S

    x2d = hidden_states.reshape(M, D)
    lnw = ln_weight.reshape(1, D)
    # One-time cast of the weights to the MXU operand dtype (done in XLA, not per tile).
    wi = wi_t.astype(matmul_dtype)
    wo = wo_t.astype(matmul_dtype)

    tm = min(tm, M)
    tf = _pick_f_tile(F, tf)
    nm = pl.cdiv(M, tm)
    nf = F // tf

    kernel = functools.partial(_t5_ff_kernel, eps=eps)

    out2d = pl.pallas_call(
        kernel,
        out_shape=jax.ShapeDtypeStruct((M, D), hidden_states.dtype),
        grid_spec=pltpu.PrefetchScalarGridSpec(
            num_scalar_prefetch=0,
            grid=(nm, nf),
            in_specs=[
                # Activations: tiled over M, constant over the F reduction axis.
                pl.BlockSpec((tm, D), lambda i, f: (i, 0)),
                # LayerNorm scale: resident.
                pl.BlockSpec((1, D), lambda i, f: (0, 0)),
                # Weights: tiled over F only; when nf == 1 they stay VMEM-resident
                # across all M-tiles (read from HBM once per layer).
                pl.BlockSpec((D, tf), lambda i, f: (0, f)),
                pl.BlockSpec((tf, D), lambda i, f: (f, 0)),
            ],
            out_specs=pl.BlockSpec((tm, D), lambda i, f: (i, 0)),
            scratch_shapes=[
                pltpu.VMEM((tm, D), matmul_dtype),   # normalized activations
                pltpu.VMEM((tm, D), jnp.float32),    # fp32 accumulator
            ],
        ),
        compiler_params=pltpu.CompilerParams(
            # M-tiles independent (megacore-shardable on v7x), F is a reduction.
            dimension_semantics=("parallel", "arbitrary"),
            # Conservative limit that leaves headroom on v7x's 64 MiB physical VMEM
            # while comfortably above the v6e/v5e scoped defaults.
            vmem_limit_bytes=48 << 20,
        ),
    )(x2d, lnw, wi, wo)

    return out2d.reshape(B, S, D)


def _reference(hidden_states, ln_weight, wi_t, wo_t, *, eps=1e-6,
               matmul_dtype=jnp.float32):
    """Pure-JAX reference mirroring the T5LayerFF forward pass."""
    xf = hidden_states.astype(jnp.float32)
    var = jnp.mean(xf * xf, axis=-1, keepdims=True)
    norm = ln_weight.astype(jnp.float32) * (xf * jax.lax.rsqrt(var + eps))
    h = jnp.dot(norm.astype(matmul_dtype), wi_t.astype(matmul_dtype),
                preferred_element_type=jnp.float32)
    h = jnp.maximum(h, 0.0)
    y = jnp.dot(h.astype(matmul_dtype), wo_t.astype(matmul_dtype),
                preferred_element_type=jnp.float32)
    return xf + y


if __name__ == "__main__":
    # Small shapes consistent with the module: batch=2, seq=8, d_model=32, d_ff=64.
    # (Real T5 d_model/d_ff are 128-aligned, which is where this tiling is lane-dense;
    #  here the block shapes equal the full dims, which Pallas accepts.)
    B, S, D, FF = 2, 8, 32, 64
    key = jax.random.PRNGKey(0)
    k_x, k_wi, k_wo = jax.random.split(key, 3)

    hidden_states = jax.random.normal(k_x, (B, S, D), dtype=jnp.float32)
    # Deterministic parameter init (synthetic; not a checkpoint load).
    ln_weight = jnp.ones((D,), dtype=jnp.float32)
    wi_t = jax.random.normal(k_wi, (D, FF), dtype=jnp.float32) * (1.0 / D ** 0.5)
    wo_t = jax.random.normal(k_wo, (FF, D), dtype=jnp.float32) * (1.0 / FF ** 0.5)

    out = t5_layer_ff(hidden_states, ln_weight, wi_t, wo_t, eps=1e-6)
    out = jax.block_until_ready(out)

    assert out.shape == (B, S, D)
    # Tight check against a reference that matches the kernel's bf16-operand /
    # fp32-accumulate matmul numerics.
    ref_bf16 = _reference(hidden_states, ln_weight, wi_t, wo_t, eps=1e-6,
                          matmul_dtype=jnp.bfloat16)
    assert jnp.allclose(out, ref_bf16, atol=2e-3, rtol=2e-3), "mismatch vs bf16 reference"
    # Loose check against the full-fp32 reference (bounds the bf16 quantization error).
    ref_f32 = _reference(hidden_states, ln_weight, wi_t, wo_t, eps=1e-6,
                         matmul_dtype=jnp.float32)
    assert jnp.allclose(out, ref_f32, atol=5e-2, rtol=5e-2), "mismatch vs fp32 reference"

    print("KERNEL_OK")
</pallas_src>

<mosaic_0001>
module attributes {stable_mosaic.version = 11 : i64} {
  func.func @_t5_ff_kernel(%arg0: i32, %arg1: i32, %arg2: memref<16x32xf32, #tpu.memory_space<vmem>>, %arg3: memref<1x32xf32, #tpu.memory_space<vmem>>, %arg4: memref<32x64xbf16, #tpu.memory_space<vmem>>, %arg5: memref<64x32xbf16, #tpu.memory_space<vmem>>, %arg6: memref<16x32xf32, #tpu.memory_space<vmem>>, %arg7: memref<16x32xbf16, #tpu.memory_space<vmem>>, %arg8: memref<16x32xf32, #tpu.memory_space<vmem>>) attributes {dimension_semantics = [#tpu.dimension_semantics<parallel>, #tpu.dimension_semantics<arbitrary>], iteration_bounds = array<i64: 1, 1>, scalar_prefetch = 0 : i64, scratch_operands = 2 : i64, tpu.core_type = #tpu.core_type<tc>, window_params = [{transform_indices = @transform_0, window_bounds = array<i64: 16, 32>}, {pipeline_mode = #tpu.pipeline_mode<synchronous>, transform_indices = @transform_1, window_bounds = array<i64: 1, 32>}, {transform_indices = @transform_2, window_bounds = array<i64: 32, 64>}, {transform_indices = @transform_3, window_bounds = array<i64: 64, 32>}, {transform_indices = @transform_4, window_bounds = array<i64: 16, 32>}]} {
    %c0_i32 = arith.constant 0 : i32
    %0 = arith.cmpi eq, %arg1, %c0_i32 : i32
    %1 = arith.extui %0 : i1 to i32
    %c0_i32_0 = arith.constant 0 : i32
    %2 = arith.cmpi ne, %1, %c0_i32_0 : i32
    scf.if %2 {
      %c0_14 = arith.constant 0 : index
      %c0_15 = arith.constant 0 : index
      %17 = vector.load %arg2[%c0_14, %c0_15] : memref<16x32xf32, #tpu.memory_space<vmem>>, vector<16x32xf32>
      %18 = arith.mulf %17, %17 : vector<16x32xf32>
      %cst_16 = arith.constant dense<0.000000e+00> : vector<16xf32>
      %19 = vector.multi_reduction <add>, %18, %cst_16 [1] : vector<16x32xf32> to vector<16xf32>
      %20 = vector.shape_cast %19 : vector<16xf32> to vector<16x1xf32>
      %cst_17 = arith.constant 3.200000e+01 : f32
      %21 = vector.broadcast %cst_17 : f32 to vector<16x1xf32>
      %22 = arith.divf %20, %21 : vector<16x1xf32>
      %c0_18 = arith.constant 0 : index
      %c0_19 = arith.constant 0 : index
      %23 = vector.load %arg3[%c0_18, %c0_19] : memref<1x32xf32, #tpu.memory_space<vmem>>, vector<1x32xf32>
      %cst_20 = arith.constant 9.99999997E-7 : f32
      %24 = vector.broadcast %cst_20 : f32 to vector<16x1xf32>
      %25 = arith.addf %22, %24 : vector<16x1xf32>
      %26 = math.rsqrt %25 : vector<16x1xf32>
      %27 = vector.broadcast %26 : vector<16x1xf32> to vector<16x32xf32>
      %28 = arith.mulf %17, %27 : vector<16x32xf32>
      %29 = vector.broadcast %23 : vector<1x32xf32> to vector<16x32xf32>
      %30 = arith.mulf %29, %28 : vector<16x32xf32>
      %31 = arith.truncf %30 : vector<16x32xf32> to vector<16x32xbf16>
      %c0_21 = arith.constant 0 : index
      %c0_22 = arith.constant 0 : index
      %32 = vector.load %arg7[%c0_21, %c0_22] : memref<16x32xbf16, #tpu.memory_space<vmem>>, vector<16x32xbf16>
      tpu.vector_store %arg7[%c0_21, %c0_22], %31 {strides = array<i32>} : memref<16x32xbf16, #tpu.memory_space<vmem>>, vector<16x32xbf16>,
      %cst_23 = arith.constant 0.000000e+00 : f32
      %33 = vector.broadcast %cst_23 : f32 to vector<16x32xf32>
      %c0_24 = arith.constant 0 : index
      %c0_25 = arith.constant 0 : index
      %34 = vector.load %arg8[%c0_24, %c0_25] : memref<16x32xf32, #tpu.memory_space<vmem>>, vector<16x32xf32>
      tpu.vector_store %arg8[%c0_24, %c0_25], %33 {strides = array<i32>} : memref<16x32xf32, #tpu.memory_space<vmem>>, vector<16x32xf32>,
    } else {
    }
    %c0 = arith.constant 0 : index
    %c0_1 = arith.constant 0 : index
    %3 = vector.load %arg7[%c0, %c0_1] : memref<16x32xbf16, #tpu.memory_space<vmem>>, vector<16x32xbf16>
    %c0_2 = arith.constant 0 : index
    %c0_3 = arith.constant 0 : index
    %4 = vector.load %arg4[%c0_2, %c0_3] : memref<32x64xbf16, #tpu.memory_space<vmem>>, vector<32x64xbf16>
    %cst = arith.constant dense<0.000000e+00> : vector<16x64xf32>
    %5 = tpu.matmul %3, %4, %cst {dimension_numbers = #tpu.dot_dimension_numbers<[1], [0], [0], [1], [0, 0, 1, 1], [], []>} : vector<16x32xbf16>, vector<32x64xbf16>, vector<16x64xf32> -> vector<16x64xf32>
    %cst_4 = arith.constant 0.000000e+00 : f32
    %6 = vector.broadcast %cst_4 : f32 to vector<16x64xf32>
    %7 = arith.maximumf %5, %6 : vector<16x64xf32>
    %c0_5 = arith.constant 0 : index
    %c0_6 = arith.constant 0 : index
    %8 = vector.load %arg8[%c0_5, %c0_6] : memref<16x32xf32, #tpu.memory_space<vmem>>, vector<16x32xf32>
    %9 = arith.truncf %7 : vector<16x64xf32> to vector<16x64xbf16>
    %c0_7 = arith.constant 0 : index
    %c0_8 = arith.constant 0 : index
    %10 = vector.load %arg5[%c0_7, %c0_8] : memref<64x32xbf16, #tpu.memory_space<vmem>>, vector<64x32xbf16>
    %cst_9 = arith.constant dense<0.000000e+00> : vector<16x32xf32>
    %11 = tpu.matmul %9, %10, %cst_9 {dimension_numbers = #tpu.dot_dimension_numbers<[1], [0], [0], [1], [0, 0, 1, 1], [], []>} : vector<16x64xbf16>, vector<64x32xbf16>, vector<16x32xf32> -> vector<16x32xf32>
    %12 = arith.addf %8, %11 : vector<16x32xf32>
    %c0_10 = arith.constant 0 : index
    %c0_11 = arith.constant 0 : index
    %13 = vector.load %arg8[%c0_10, %c0_11] : memref<16x32xf32, #tpu.memory_space<vmem>>, vector<16x32xf32>
    tpu.vector_store %arg8[%c0_10, %c0_11], %12 {strides = array<i32>} : memref<16x32xf32, #tpu.memory_space<vmem>>, vector<16x32xf32>,
    %c0_i32_12 = arith.constant 0 : i32
    %14 = arith.cmpi eq, %arg1, %c0_i32_12 : i32
    %15 = arith.extui %14 : i1 to i32
    %c0_i32_13 = arith.constant 0 : i32
    %16 = arith.cmpi ne, %15, %c0_i32_13 : i32
    scf.if %16 {
      %c0_14 = arith.constant 0 : index
      %c0_15 = arith.constant 0 : index
      %17 = vector.load %arg2[%c0_14, %c0_15] : memref<16x32xf32, #tpu.memory_space<vmem>>, vector<16x32xf32>
      %c0_16 = arith.constant 0 : index
      %c0_17 = arith.constant 0 : index
      %18 = vector.load %arg8[%c0_16, %c0_17] : memref<16x32xf32, #tpu.memory_space<vmem>>, vector<16x32xf32>
      %19 = arith.addf %17, %18 : vector<16x32xf32>
      %c0_18 = arith.constant 0 : index
      %c0_19 = arith.constant 0 : index
      %20 = vector.load %arg6[%c0_18, %c0_19] : memref<16x32xf32, #tpu.memory_space<vmem>>, vector<16x32xf32>
      tpu.vector_store %arg6[%c0_18, %c0_19], %19 {strides = array<i32>} : memref<16x32xf32, #tpu.memory_space<vmem>>, vector<16x32xf32>,
    } else {
    }
    return
  }
  func.func @transform_0(%arg0: i32, %arg1: i32) -> (i32, i32) {
    %c0_i32 = arith.constant 0 : i32
    %c0_i32_0 = arith.constant 0 : i32
    return %arg0, %c0_i32 : i32, i32
  }
  func.func @transform_1(%arg0: i32, %arg1: i32) -> (i32, i32) {
    %c0_i32 = arith.constant 0 : i32
    %c0_i32_0 = arith.constant 0 : i32
    %c0_i32_1 = arith.constant 0 : i32
    return %c0_i32, %c0_i32_0 : i32, i32
  }
  func.func @transform_2(%arg0: i32, %arg1: i32) -> (i32, i32) {
    %c0_i32 = arith.constant 0 : i32
    %c0_i32_0 = arith.constant 0 : i32
    return %c0_i32, %arg1 : i32, i32
  }
  func.func @transform_3(%arg0: i32, %arg1: i32) -> (i32, i32) {
    %c0_i32 = arith.constant 0 : i32
    %c0_i32_0 = arith.constant 0 : i32
    return %arg1, %c0_i32 : i32, i32
  }
  func.func @transform_4(%arg0: i32, %arg1: i32) -> (i32, i32) {
    %c0_i32 = arith.constant 0 : i32
    %c0_i32_0 = arith.constant 0 : i32
    return %arg0, %c0_i32 : i32, i32
  }
}

</mosaic_0001>

<bundles_post_ra>
// kernel: tpu_custom_call.1
= control target key start
LH: loop header
LB: loop body
LE: loop exit
PB: predicated region body
PF: predicated region fallthrough
CT: control target
= control target key end

     0   :  { %vm27_vm0 = vcmask 261120   ;;  %s398_s0 = inlined_call_operand.vmem [shape: f32[16,32], index: 0, kind: input, shape index: {}]   ;;  %s399_s1 = inlined_call_operand.vmem [shape: f32[1,32], index: 1, kind: input, shape index: {}]   ;;  %s400_s2 = inlined_call_operand.vmem [shape: bf16[32,64], index: 2, kind: input, shape index: {}]   ;;  %s401_s3 = inlined_call_operand.vmem [shape: bf16[64,32], index: 3, kind: input, shape index: {}]   ;;  %s402_s4 = inlined_call_operand.hbm [shape: f32[16,32], index: 4, kind: output, shape index: {}]  }
   0x1   :  { %v340_v0 = vld [vmem:[%s398_s0] sm:$0xff]  ;;  %v345_v1 = vld [vmem:[%s398_s0 + $0x8] sm:$0xff] }
   0x2   :  { %v25_v2 = vmul.f32 %v340_v0, %v340_v0  ;;  %v26_v3 = vmul.f32 %v345_v1, %v345_v1 }
   0x4   :  { %v28_v4 = vsel %vm27_vm0, %v25_v2, 0.0  ;;  %v31_v5 = vsel %vm27_vm0, %v26_v3, 0.0 }
   0x5   :  { %29 = vadd.xlane.f32.xlu0 %v28_v4 }
   0x6   :  { %9 = vsyncpa [#allocation5], 0  ;;  %v273_v6 = vld [vmem:[%s400_s2] sm:$0xff]   ;;  %v307_v7 = vmov 0.0   ;;  %v274_v8 = vld [vmem:[%s400_s2 + $0x8] sm:$0xff]   ;;  %vm308_vm1 = vmmov 0  }
   0x7   :  { %248 = vmatprep.subr.bf16.mxu0 %v307_v7  ;;  %54 = vst.msk [vmem:[#allocation3] sm:$0xff] %vm27_vm0, %v307_v7  ;;  %55 = vst.msk [vmem:[#allocation3 + $0x8] sm:$0xff] %vm27_vm0, %v307_v7  ;;  %256 = vmatprep.subr.bf16.mxu1 %v307_v7  ;;  %v275_v9 = vld [vmem:[%s401_s3] sm:$0xff]   ;;  %v276_v10 = vld [vmem:[%s401_s3 + $0x8] sm:$0xff]   ;;  %vm155_vm2 = vcmask 523264  }
   0x8   :  { %249 = vmatpush3.bf16.msra.mxu0 %v273_v6  ;;  %252 = vmatprep.mubr.msk.bf16.mxu0 %vm308_vm1, %v307_v7  ;;  %v231_v20 = vld [vmem:[%s399_s1] ss:$0 sm:$0xff]  ;;  %v277_v26 = vld [vmem:[%s401_s3 + $0x10] sm:$0xff]   ;;  %v278_v27 = vld [vmem:[%s401_s3 + $0x18] sm:$0xff]   ;;  %s309_s1 = smov [#allocation4]  }
   0x9   :  { %32 = vadd.xlane.f32.xlu0 %v31_v5  ;;  %250 = vmatprep.subr.bf16.mxu0 %v307_v7  ;;  %s220_s3 = sshll.u32 %s309_s1, 4  ;;  %s221_s3 = int_to_ptr.vmem [resolvable:$true] %s220_s3 }
   0xa   :  { %264 = vmatprep.mubr.msk.bf16.mxu1 %vm308_vm1, %v307_v7  ;;  %257 = vmatpush3.bf16.msra.mxu1 %v275_v9  ;;  %s283_s5 = scalar_lea.vmem %s221_s3, 256  ;;  %p288_p1 = scmp.lt.s32.totalorder %s221_s3, %s221_s3 }
   0xb   :  { %258 = vmatprep.subr.bf16.mxu1 %v307_v7  ;;  %p284_p0 = scmp.ne.s32.totalorder %s221_s3, %s283_s5  ;;  %p289_p2 = scmp.lt.s32.totalorder %s283_s5, %s283_s5 }
   0xc   :  { %251 = vmatpush3.bf16.msra.mxu0 %v274_v8 }
   0xd   :  { %p290_p3 = por %p289_p2, %p288_p1 }
   0xe   :  { %259 = vmatpush3.bf16.msra.mxu1 %v276_v10  ;;  %v120_v35 = vld [vmem:[#allocation3] sm:$0xff]  ;;  %v121_v37 = vld [vmem:[#allocation3 + $0x8] sm:$0xff] }
   0xf   :  { %260 = vmatprep.subr.bf16.mxu1 %v307_v7  ;;  %p291_p4 = pnand %p290_p3, %p284_p0 }
  0x12   :  { %261 = vmatpush3.bf16.msra.mxu1 %v277_v26 }
  0x13   :  { %262 = vmatprep.subr.bf16.mxu1 %v307_v7 }
  0x16   :  { %263 = vmatpush3.bf16.msra.mxu1 %v278_v27 }
  0x92   :  { %v30_v11 = vpop.xlane.xlu0 %29 }
  0x93   :  { %v35_v12 = vmul.f32 0.03125, %v30_v11 }
  0x95   :  { %v38_v13 = vadd.f32 1e-06, %v35_v12 }
  0x96   :  { %v33_v14 = vpop.xlane.xlu0 %32 }
  0x97   :  { %279 = vrsqrt.f32 %v38_v13  ;;  %v36_v15 = vmul.f32 0.03125, %v33_v14 }
  0x99   :  { %v39_v16 = vadd.f32 1e-06, %v36_v15 }
  0x9b   :  { %281 = vrsqrt.f32 %v39_v16 }
  0xa1   :  { %v280_v17 = vpop.eup %279 }
  0xa2   :  { %v42_v18 = vmul.f32 %v280_v17, %v340_v0 }
  0xa4   :  { %v50_v22 = vmul.f32 %v231_v20, %v42_v18 }
  0xa5   :  { %v282_v19 = vpop.eup %281 }
  0xa6   :  { %v43_v21 = vmul.f32 %v282_v19, %v345_v1 }
  0xa8   :  { %v51_v23 = vmul.f32 %v231_v20, %v43_v21 }
  0xaa   :  { %v52_v24 = vpack.c.bf16 %v51_v23, %v50_v22 }
  0xac   :  { %53 = vst.msk [vmem:[#allocation2] sm:$0xff] %vm27_vm0, %v52_v24 }
  0xb3   :  { %v56_v25 = vld [vmem:[#allocation2] sm:$0xff] }
  0xb4   :  { %253 = vmatmul.mubr.msk.bf16.vlgmr.msra.gmra.mrb[0].mxu0 %vm27_vm0, %v56_v25 }
 0x187   :  { %v111_v28 = vpop.f32.mrb[0].mxu0 }
 0x188   :  { %v254_v29 = vpop.f32.mrb[1].mxu0  ;;  %v118_v31 = vmax.f32 %v111_v28, 0.0 }
 0x189   :  { %v114_v30 = vpop.f32.mrb[2].mxu0 }
 0x18a   :  { %v119_v32 = vmax.f32 %v114_v30, 0.0  ;;  %v255_v33 = vpop.f32.mrb[3].mxu0 }
 0x18c   :  { %v122_v34 = vpack.c.bf16 %v119_v32, %v118_v31 }
 0x18e   :  { %265 = vmatmul.mubr.msk.bf16.vlgmr.msra.gmra.mrb[0].mxu1 %vm155_vm2, %v122_v34 }
 0x261   :  { %v193_v36 = vpop.f32.mrb[0].mxu1 }
 0x262   :  { %v200_v38 = vadd.f32 %v193_v36, %v120_v35  ;;  %v266_v39 = vpop.f32.mrb[1].mxu1 }
 0x263   :  { %v196_v40 = vpop.f32.mrb[2].mxu1 }
 0x264   :  { %202 = vst.msk [vmem:[#allocation3] sm:$0xff] %vm27_vm0, %v200_v38  ;;  %v201_v41 = vadd.f32 %v196_v40, %v121_v37  ;;  %v267_v42 = vpop.f32.mrb[3].mxu1 }
 0x266   :  { %203 = vst.msk [vmem:[#allocation3 + $0x8] sm:$0xff] %vm27_vm0, %v201_v41 }
 0x26b   :  { %v209_v43 = vld [vmem:[#allocation3] sm:$0xff] }
 0x26c   :  { %v211_v44 = vadd.f32 %v209_v43, %v340_v0 }
 0x26d   :  { %v210_v45 = vld [vmem:[#allocation3 + $0x8] sm:$0xff] }
 0x26e   :  { %v212_v46 = vadd.f32 %v210_v45, %v345_v1  ;;  %213 = vst.msk [vmem:[#allocation4] sm:$0xff] %vm27_vm0, %v211_v44 }
 0x270   :  { %214 = vst.msk [vmem:[#allocation4 + $0x8] sm:$0xff] %vm27_vm0, %v212_v46 }
 0x271   :  { %294 = shalt.err (!%p291_p4)
}
 0x272   :  { %s295_s8 = scalar_lea.hbm %s402_s4, 256 }
 0x273   :  { %p296_p5 = scmp.ne.s32.totalorder %s402_s4, %s295_s8  ;;  %p299_p6 = scmp.lt.u32.totalorder %s295_s8, %s402_s4 }
 0x275   :  { %p301_p7 = pnand %p299_p6, %p296_p5 }
 0x277   :  { %304 = shalt.err (!%p301_p7)
}
 0x278   :  { %s310_s13 = smov 128   ;;  %s311_s14 = smov 8  }
 0x279   :  { %226 = dma.vmem_to_hbm [thread:$0]  %s221_s3, 256, %s402_s4, [#allocation5], %s310_s13, %s310_s13, %s311_s14  }
 0x27a   :  { %305 = dma.done.wait [#allocation5], 256  }
 0x27b   :  { %306 = vsyncadd [#allocation5], 4294967040 }
 0x27c   :  { %230 = vsyncpa [#allocation5], 1 }

</bundles_post_ra>
